<compile_context>
chip_gen: v6e
topology: v6e:2x2x1
jax: 0.10.0
libtpu: 0.0.40
codegen_flags: <defaults>
</compile_context>

<pallas_src>
import math

import numpy as np

import jax
import jax.numpy as jnp
from jax.experimental import pallas as pl
from jax.experimental.pallas import tpu as pltpu

CONSTANTS = True
TERMS = [0, 1, 2]  # concatenation order, as in the PyTorch module


def make_taylor_exp(input_dim: int, row_tile: int = 2048):
    D = input_dim
    r2 = math.sqrt(2.0) if CONSTANTS else 1.0
    rd = math.sqrt(D) if CONSTANTS else 1.0
    rrd = math.sqrt(rd) if CONSTANTS else 1.0
    inv_rrd = 1.0 / rrd          # term2 scale: d^(-1/4)
    scale3 = 1.0 / (r2 * rd)     # term3 scale: 1/(sqrt(2)*sqrt(d))

    F = 1 + D + D * D            # 273 for D=16
    P = 3                        # bf16 pieces per f32 value (exact split)
    K1 = P * D + 1               # [x pieces | ones]
    K2 = 2 * P * D + 1           # [y pieces | z pieces | ones]

    # Constant 0/1 one-hot expansion weights (exact in bf16).
    w1_np = np.zeros((K1, F), np.float32)
    w2_np = np.zeros((K2, F), np.float32)
    w1_np[P * D, 0] = 1.0                 # f1 col0 <- 1
    w1_np[P * D, 1:1 + D] = 1.0           # f1 term2 cols <- 1
    w2_np[2 * P * D, 0] = 1.0             # f2 col0 <- 1
    for p in range(P):
        for i in range(D):
            # f1 term3 cols (i, :) <- x_i (summed over the 3 pieces)
            w1_np[p * D + i, 1 + D + i * D: 1 + D + (i + 1) * D] = 1.0
            # f2 term2 col j <- z_j = x_j * d^-1/4
            w2_np[P * D + p * D + i, 1 + i] = 1.0
            # f2 term3 cols (:, j) <- y_j = x_j / (sqrt(2)*sqrt(d))
            w2_np[p * D + i, 1 + D + i::D] = 1.0
    w1 = jnp.asarray(w1_np, dtype=jnp.bfloat16)
    w2 = jnp.asarray(w2_np, dtype=jnp.bfloat16)

    def kernel(x_ref, w1_ref, w2_ref, o_ref):
        f32 = jnp.float32
        x = x_ref[...].astype(f32)                       # (T, D)
        T = x.shape[0]

        def split3(v):
            # Three bf16 pieces whose sum reconstructs v to ~2^-24 relative;
            # with 0/1 weights and f32 accumulation the MXU expansion below is
            # f32-accurate irrespective of MXU input precision.
            hi = v.astype(jnp.bfloat16)
            r = v - hi.astype(f32)
            md = r.astype(jnp.bfloat16)
            lo = (r - md.astype(f32)).astype(jnp.bfloat16)
            return hi, md, lo

        ones = jnp.ones((T, 1), jnp.bfloat16)
        xh, xm, xl = split3(x)
        # NOTE: scales folded into one operand before the product (identical to
        # torch's post-product division up to ~1 ulp in f32).
        yh, ym, yl = split3(x * scale3)
        zh, zm, zl = split3(x * inv_rrd)

        a_in = jnp.concatenate([xh, xm, xl, ones], axis=-1)               # (T, K1)
        b_in = jnp.concatenate([yh, ym, yl, zh, zm, zl, ones], axis=-1)   # (T, K2)

        # MXU one-hot lane expansion (keeps the XLU idle, VPU lane-dense).
        f1 = jnp.dot(a_in, w1_ref[...], preferred_element_type=f32)       # (T, F)
        f2 = jnp.dot(b_in, w2_ref[...], preferred_element_type=f32)       # (T, F)

        # One fused, lane-dense store of the full [ones | term2 | term3] rows.
        o_ref[...] = (f1 * f2).astype(o_ref.dtype)

    def apply(x):
        *lead, d = x.shape
        assert d == D, f"expected last dim {D}, got {d}"
        N = math.prod(lead) if lead else 1
        x2d = x.reshape(N, D)

        itemsize = jnp.dtype(x.dtype).itemsize
        sub = 8 if itemsize >= 4 else 16             # sublane tile for dtype
        n_sub = pl.cdiv(N, sub) * sub
        T = max(sub, (min(row_tile, n_sub) // sub) * sub)
        if T >= n_sub and n_sub >= 2 * sub:
            # >= 2 grid steps so both v7x TensorCores get work.
            T = pl.cdiv(n_sub, 2 * sub) * sub
        n_pad = pl.cdiv(N, T) * T
        xp = x2d if n_pad == N else jnp.pad(x2d, ((0, n_pad - N), (0, 0)))

        out = pl.pallas_call(
            kernel,
            out_shape=jax.ShapeDtypeStruct((n_pad, F), x.dtype),
            grid_spec=pltpu.PrefetchScalarGridSpec(
                num_scalar_prefetch=0,
                grid=(n_pad // T,),
                in_specs=[
                    pl.BlockSpec((T, D), lambda i: (i, 0)),
                    pl.BlockSpec((K1, F), lambda i: (0, 0)),   # resident weights
                    pl.BlockSpec((K2, F), lambda i: (0, 0)),   # resident weights
                ],
                out_specs=pl.BlockSpec((T, F), lambda i: (i, 0)),
            ),
            compiler_params=pltpu.CompilerParams(
                dimension_semantics=("parallel",),
                vmem_limit_bytes=32 * 1024 * 1024),
            cost_estimate=pl.CostEstimate(
                flops=int(2 * n_pad * (K1 + K2) * F + n_pad * F),
                transcendentals=0,
                bytes_accessed=int(n_pad * (D + F) * itemsize
                                   + (K1 + K2) * F * 2)),
        )(xp, w1, w2)

        if n_pad != N:
            out = out[:N]          # single cheap slice only on the padded path
        return out.reshape(*lead, F)

    return apply


def taylor_exp_ref(x, input_dim):
    """Pure-JAX reference matching the PyTorch forward."""
    D = input_dim
    r2 = math.sqrt(2.0)
    rd = math.sqrt(D)
    rrd = math.sqrt(rd)
    x2 = (x[..., :, None] * x[..., None, :]).reshape(*x.shape[:-1], D * D) / r2
    term1 = jnp.ones(x[..., :1].shape, dtype=x.dtype)
    term2 = x / rrd
    term3 = x2 / rd
    terms = [term1, term2, term3]
    return jnp.concatenate([terms[t] for t in TERMS], axis=-1)


if __name__ == "__main__":
    D = 16
    feat = 1 + D + D * D

    # Case 1: small f32 input; grid splits into 2 row tiles.
    x1 = jax.random.normal(jax.random.PRNGKey(0), (2, 2, 8, D), dtype=jnp.float32)
    taylor_exp = make_taylor_exp(input_dim=D)            # default row_tile=2048
    out1 = jax.block_until_ready(taylor_exp(x1))
    ref1 = taylor_exp_ref(x1, D)
    assert out1.shape == (2, 2, 8, feat), out1.shape
    assert jnp.allclose(out1, ref1, atol=1e-5, rtol=1e-5), "mismatch (case 1)"

    # Case 2: exercises the row-padding path (N=96 rows, T=64 -> padded to 128).
    x2 = jax.random.normal(jax.random.PRNGKey(1), (2, 2, 24, D), dtype=jnp.float32)
    out2 = jax.block_until_ready(make_taylor_exp(D, row_tile=64)(x2))
    ref2 = taylor_exp_ref(x2, D)
    assert out2.shape == (2, 2, 24, feat), out2.shape
    assert jnp.allclose(out2, ref2, atol=1e-5, rtol=1e-5), "mismatch (case 2)"

    # Case 3: bf16 input/output path (kernel computes in f32 internally,
    # compared against an f32 reference with bf16-appropriate tolerance).
    x3 = jax.random.normal(jax.random.PRNGKey(2), (2, 2, 16, D), dtype=jnp.bfloat16)
    out3 = jax.block_until_ready(taylor_exp(x3))
    ref3 = taylor_exp_ref(x3.astype(jnp.float32), D)
    assert out3.shape == (2, 2, 16, feat), out3.shape
    assert jnp.allclose(out3.astype(jnp.float32), ref3, atol=3e-2, rtol=3e-2), \
        "mismatch (case 3, bf16)"

    print("KERNEL_OK")
</pallas_src>

<mosaic_0001>
module attributes {stable_mosaic.version = 11 : i64} {
  func.func @kernel(%arg0: i32, %arg1: memref<16x16xf32, #tpu.memory_space<vmem>>, %arg2: memref<49x273xbf16, #tpu.memory_space<vmem>>, %arg3: memref<97x273xbf16, #tpu.memory_space<vmem>>, %arg4: memref<16x273xf32, #tpu.memory_space<vmem>>) attributes {dimension_semantics = [#tpu.dimension_semantics<parallel>], iteration_bounds = array<i64: 2>, scalar_prefetch = 0 : i64, scratch_operands = 0 : i64, tpu.core_type = #tpu.core_type<tc>, window_params = [{transform_indices = @transform_0, window_bounds = array<i64: 16, 16>}, {pipeline_mode = #tpu.pipeline_mode<synchronous>, transform_indices = @transform_1, window_bounds = array<i64: 49, 273>}, {pipeline_mode = #tpu.pipeline_mode<synchronous>, transform_indices = @transform_2, window_bounds = array<i64: 97, 273>}, {transform_indices = @transform_3, window_bounds = array<i64: 16, 273>}]} {
    %c0 = arith.constant 0 : index
    %c0_0 = arith.constant 0 : index
    %0 = vector.load %arg1[%c0, %c0_0] : memref<16x16xf32, #tpu.memory_space<vmem>>, vector<16x16xf32>
    %cst = arith.constant 1.000000e+00 : bf16
    %1 = vector.broadcast %cst : bf16 to vector<16x1xbf16>
    %2 = arith.truncf %0 : vector<16x16xf32> to vector<16x16xbf16>
    %3 = arith.extf %2 : vector<16x16xbf16> to vector<16x16xf32>
    %4 = arith.subf %0, %3 : vector<16x16xf32>
    %5 = arith.truncf %4 : vector<16x16xf32> to vector<16x16xbf16>
    %6 = arith.extf %5 : vector<16x16xbf16> to vector<16x16xf32>
    %7 = arith.subf %4, %6 : vector<16x16xf32>
    %8 = arith.truncf %7 : vector<16x16xf32> to vector<16x16xbf16>
    %cst_1 = arith.constant 0.176776692 : f32
    %9 = vector.broadcast %cst_1 : f32 to vector<16x16xf32>
    %10 = arith.mulf %0, %9 : vector<16x16xf32>
    %11 = arith.truncf %10 : vector<16x16xf32> to vector<16x16xbf16>
    %12 = arith.extf %11 : vector<16x16xbf16> to vector<16x16xf32>
    %13 = arith.subf %10, %12 : vector<16x16xf32>
    %14 = arith.truncf %13 : vector<16x16xf32> to vector<16x16xbf16>
    %15 = arith.extf %14 : vector<16x16xbf16> to vector<16x16xf32>
    %16 = arith.subf %13, %15 : vector<16x16xf32>
    %17 = arith.truncf %16 : vector<16x16xf32> to vector<16x16xbf16>
    %cst_2 = arith.constant 5.000000e-01 : f32
    %18 = vector.broadcast %cst_2 : f32 to vector<16x16xf32>
    %19 = arith.mulf %0, %18 : vector<16x16xf32>
    %20 = arith.truncf %19 : vector<16x16xf32> to vector<16x16xbf16>
    %21 = arith.extf %20 : vector<16x16xbf16> to vector<16x16xf32>
    %22 = arith.subf %19, %21 : vector<16x16xf32>
    %23 = arith.truncf %22 : vector<16x16xf32> to vector<16x16xbf16>
    %24 = arith.extf %23 : vector<16x16xbf16> to vector<16x16xf32>
    %25 = arith.subf %22, %24 : vector<16x16xf32>
    %26 = arith.truncf %25 : vector<16x16xf32> to vector<16x16xbf16>
    %27 = tpu.concatenate %2, %5, %8, %1 in 1 : vector<16x16xbf16>, vector<16x16xbf16>, vector<16x16xbf16>, vector<16x1xbf16> -> vector<16x49xbf16>
    %28 = tpu.concatenate %11, %14, %17, %20, %23, %26, %1 in 1 : vector<16x16xbf16>, vector<16x16xbf16>, vector<16x16xbf16>, vector<16x16xbf16>, vector<16x16xbf16>, vector<16x16xbf16>, vector<16x1xbf16> -> vector<16x97xbf16>
    %c0_3 = arith.constant 0 : index
    %c0_4 = arith.constant 0 : index
    %29 = vector.load %arg2[%c0_3, %c0_4] : memref<49x273xbf16, #tpu.memory_space<vmem>>, vector<49x273xbf16>
    %cst_5 = arith.constant dense<0.000000e+00> : vector<16x273xf32>
    %30 = tpu.matmul %27, %29, %cst_5 {dimension_numbers = #tpu.dot_dimension_numbers<[1], [0], [0], [1], [0, 0, 1, 1], [], []>} : vector<16x49xbf16>, vector<49x273xbf16>, vector<16x273xf32> -> vector<16x273xf32>
    %c0_6 = arith.constant 0 : index
    %c0_7 = arith.constant 0 : index
    %31 = vector.load %arg3[%c0_6, %c0_7] : memref<97x273xbf16, #tpu.memory_space<vmem>>, vector<97x273xbf16>
    %cst_8 = arith.constant dense<0.000000e+00> : vector<16x273xf32>
    %32 = tpu.matmul %28, %31, %cst_8 {dimension_numbers = #tpu.dot_dimension_numbers<[1], [0], [0], [1], [0, 0, 1, 1], [], []>} : vector<16x97xbf16>, vector<97x273xbf16>, vector<16x273xf32> -> vector<16x273xf32>
    %33 = arith.mulf %30, %32 : vector<16x273xf32>
    %c0_9 = arith.constant 0 : index
    %c0_10 = arith.constant 0 : index
    %34 = vector.load %arg4[%c0_9, %c0_10] : memref<16x273xf32, #tpu.memory_space<vmem>>, vector<16x273xf32>
    tpu.vector_store %arg4[%c0_9, %c0_10], %33 {strides = array<i32>} : memref<16x273xf32, #tpu.memory_space<vmem>>, vector<16x273xf32>,
    return
  }
  func.func @transform_0(%arg0: i32) -> (i32, i32) {
    %c0_i32 = arith.constant 0 : i32
    %c0_i32_0 = arith.constant 0 : i32
    return %arg0, %c0_i32 : i32, i32
  }
  func.func @transform_1(%arg0: i32) -> (i32, i32) {
    %c0_i32 = arith.constant 0 : i32
    %c0_i32_0 = arith.constant 0 : i32
    %c0_i32_1 = arith.constant 0 : i32
    return %c0_i32, %c0_i32_0 : i32, i32
  }
  func.func @transform_2(%arg0: i32) -> (i32, i32) {
    %c0_i32 = arith.constant 0 : i32
    %c0_i32_0 = arith.constant 0 : i32
    %c0_i32_1 = arith.constant 0 : i32
    return %c0_i32, %c0_i32_0 : i32, i32
  }
  func.func @transform_3(%arg0: i32) -> (i32, i32) {
    %c0_i32 = arith.constant 0 : i32
    %c0_i32_0 = arith.constant 0 : i32
    return %arg0, %c0_i32 : i32, i32
  }
}

</mosaic_0001>

<bundles_post_ra>
// kernel: tpu_custom_call.1
= control target key start
LH: loop header
LB: loop body
LE: loop exit
PB: predicated region body
PF: predicated region fallthrough
CT: control target
= control target key end

     0   :  { %8 = vsyncpa [#allocation3], 0  ;;  %s1263_s0 = inlined_call_operand.vmem [shape: f32[32,16], index: 0, kind: input, shape index: {}]   ;;  %s1264_s1 = inlined_call_operand.vmem [shape: bf16[49,273], index: 1, kind: input, shape index: {}]   ;;  %s1265_s2 = inlined_call_operand.vmem [shape: bf16[97,273], index: 2, kind: input, shape index: {}]   ;;  %s1266_s3 = inlined_call_operand.hbm [shape: f32[32,273], index: 3, kind: output, shape index: {}]  }
   0x1   :  { %10 = vsyncpa [#allocation3 + $0x1], 0  ;;  %s1021_s12 = smov 0   ;;  %s1023_s13 = smov 0  }
   0x2   :  { %s1025_s14 = smov 0   ;;  %s1027_s15 = smov 0  }
   0x3 LB: > { %s1042_s16 = sadd.s32 4294967295, %s988_s15   ;;  %s744_s17 = sadd.s32 4294967294, %s988_s15   ;;  %s988_s15 = sphi %s1027_s15, %s1272_s15   ;;  %s984_s14 = sphi %s1025_s14, %s1271_s14   ;;  %s980_s13 = sphi %s1023_s13, %s1270_s13   ;;  %s976_s12 = sphi %s1021_s12, %s1269_s12  }
   0x4   : > { %s1046_s18 = sadd.s32 1, %s988_s15   ;;  %s91_s19 = sadd.s32 1, %s984_s14 }
   0x5   : > { %s88_s20 = ssub.s32 %s988_s15, %s1046_s18  ;;  %p101_p0 = scmp.ne.s32.totalorder %s984_s14, %s980_s13 }
   0x6   : > { %p89_p1 = scmp.eq.s32.totalorder %s88_s20, 0  ;;  %p102_p2 = scmp.eq.s32.totalorder %s1042_s16, 1 }
   0x7   : > { %p107_p3 = scmp.ne.s32.totalorder %s980_s13, %s976_s12  ;;  %p108_p4 = scmp.eq.s32.totalorder %s744_s17, 1 }
   0x8   : > { %s1057_s21 = scalar_select %p89_p1, %s984_s14, %s91_s19  }
   0x9   : > { %p1059_p5 = por %p102_p2, %p101_p0  ;;  %p1063_p6 = por %p108_p4, %p107_p3 }
   0xa   : > { %p747_p7 = scmp.ge.s32.totalorder %s988_s15, 1  ;;  %p141_p8 = scmp.lt.s32.totalorder %s988_s15, 3 }
   0xc   : > { %p142_p9 = pnand %p747_p7, %p141_p8 }
   0xd   : > { %s748_s24 = sshll.u32 (!%p142_p9), %s1042_s16, 1  ;;  %s993_s8 = smov (!%p142_p9), 16  }
   0xe   : > { %145 = sbr.rel (%p142_p9) target bundleno = 398 (0x18e), region = 32  ;;  %p166_p10 = scmp.lt.s32.totalorder (!%p142_p9), %s748_s24, 3 }
   0xf   : > { %s995_s10 = smov (!%p142_p9), 48   ;;  %s996_s11 = smov (!%p142_p9), 64  }
  0x10   : > { %s997_s17 = smov (!%p142_p9), 80   ;;  %s836_s26 = smul.u32 (!%p142_p9), 768, %s1042_s16 }
  0x11   : > { %s998_s6 = smov (!%p142_p9), [#allocation2]  }
  0x12   : > { %s1218_s30 = scalar_lea.hbm (!%p142_p9), %s1266_s3, %s836_s26  ;;  %s932_s7 = sshll.u32 (!%p142_p9), %s998_s6, 4  ;;  %s933_s7 = int_to_ptr.vmem [resolvable:$false] %s932_s7 }
  0x13   : > { %v271_v0 = vld [vmem:[%s1264_s1 + $0x48] sm:$0x11]  ;;  %vm332_vm0 = vcmask 1040384   ;;  %v990_v2 = vmov 0   ;;  %v991_v5 = vmov 0.0   ;;  %s1274_s24 = smov (!%p166_p10, %s748_s24), 3 }
  0x14   : > { %v760_v1 = vcombine.high %v271_v0, %v271_v0  ;;  %v1074_v3 = vsel %vm332_vm0, 65535, %v990_v2  ;;  %v759_v4 = vcombine.low %v271_v0, %v271_v0  ;;  %376 = vmatprep.mubr.bf16.mxu0 %v990_v2  ;;  %805 = vmatprep.subr.bf16.mxu1 %v991_v5  ;;  %v888_v6 = vld [vmem:[%s1264_s1 + $0x50] ss:$0 sps:$4 sm:$0x11]   ;;  %v889_v9 = vld [vmem:[%s1264_s1 + $0x34] ss:$12 sps:$4 sm:$0xff]  }
  0x15   : > { %v342_v10 = vand.u32 %v888_v6, %v1074_v3  ;;  %s749_s4 = sshll.u32 %s1274_s24, 3  ;;  %v891_v11 = vld [vmem:[%s1264_s1 + $0x30] ss:$12 sps:$4 sm:$0xff]   ;;  %v892_v12 = vld [vmem:[%s1264_s1 + $0x38] ss:$12 sps:$4 sm:$0xff]   ;;  %vm992_vm1 = vmmov 0  }
  0x16   : > { %v339_v7 = vand.u32 %v760_v1, %v1074_v3  ;;  %v336_v8 = vand.u32 %v759_v4, %v1074_v3  ;;  %s169_s9 = scalar_lea.vmem %s1263_s0, %s749_s4  ;;  %v893_v15 = vld [vmem:[%s1264_s1 + $0x1c] ss:$12 sps:$4 sm:$0xff]   ;;  %v895_v21 = vld [vmem:[%s1264_s1 + $0x18] ss:$12 sps:$4 sm:$0xff]   ;;  %v896_v25 = vld [vmem:[%s1264_s1 + $0x20] ss:$12 sps:$4 sm:$0xff]   ;;  %813 = vmatprep.mubr.msk.bf16.mxu1 %vm992_vm1, %v991_v5 }
  0x17   : > { %806 = vmatpush3.bf16.msra.mxu1 %v342_v10  ;;  %v174_v13 = vld [vmem:[%s169_s9] sm:$0xff]  ;;  %v175_v14 = vld [vmem:[%s169_s9 + $0x8] sm:$0xff]  ;;  %v452_v28 = vld [vmem:[%s1265_s2 + $0x90] sm:$0x11]  ;;  %s994_s9 = smov 32   ;;  %vm219_vm2 = vcmask 130048  }
  0x18   : > { %352 = vmatprep.subr.bf16.mxu0 %v339_v7  ;;  %807 = vmatprep.subr.bf16.mxu1 %v991_v5  ;;  %v1100_v16 = vpack.c.bf16 %v175_v14, %v174_v13  ;;  %v187_v17 = vmul.f32 0.17677669, %v174_v13  ;;  %v188_v18 = vmul.f32 0.17677669, %v175_v14  ;;  %v200_v19 = vmul.f32 0.5, %v174_v13  ;;  %s162_s24 = sand.u32 1, %s980_s13  }
  0x19   : > { %353 = vmatpush1.bf16.msra.mxu0 %v336_v8  ;;  %v201_v20 = vmul.f32 0.5, %v175_v14  ;;  %v897_v27 = vld [vmem:[%s1264_s1 + $0x4] ss:$12 sps:$4 sm:$0xff]   ;;  %v899_v35 = vld [vmem:[%s1264_s1] ss:$12 sps:$4 sm:$0xff]   ;;  %v782_v36 = vcombine.low %v452_v28, %v452_v28  ;;  %v783_v37 = vcombine.high %v452_v28, %v452_v28  ;;  %vm223_vm3 = vcmask 261120  }
  0x1a   : > { %354 = vmatprep.subr.bf16.mxu0 %v889_v9  ;;  %v177_v22 = vunpack.c.l.bf16 %v1100_v16  ;;  %v178_v23 = vunpack.c.h.bf16 %v1100_v16  ;;  %v1107_v24 = vpack.c.bf16 %v188_v18, %v187_v17  ;;  %v900_v41 = vld [vmem:[%s1264_s1 + $0x8] ss:$12 sps:$4 sm:$0xff]   ;;  %v903_v0 = vld [vmem:[%s1265_s2 + $0x98] ss:$0 sps:$4 sm:$0x11]   ;;  %vm226_vm4 = vcmask 392192  }
  0x1b   : > { %808 = vmatpush3.bf16.msra.mxu1 %v892_v12  ;;  %v202_v26 = vpack.c.bf16 %v201_v20, %v200_v19  ;;  %v565_v44 = vand.u32 %v783_v37, %v1074_v3  ;;  %v562_v48 = vand.u32 %v782_v36, %v1074_v3  ;;  %vm329_vm5 = vcmask 400384   ;;  %v906_v8 = vld [vmem:[%s1265_s2 + $0x7c] ss:$12 sps:$4 sm:$0xff]   ;;  %v904_v10 = vld [vmem:[%s1265_s2 + $0x78] ss:$12 sps:$4 sm:$0xff]   ;;  %s835_s25 = smul.u32 48, %s162_s24 }
  0x1c   : > { %809 = vmatprep.subr.bf16.mxu1 %v991_v5  ;;  %v179_v29 = vsub.f32 %v174_v13, %v177_v22  ;;  %v180_v30 = vsub.f32 %v175_v14, %v178_v23  ;;  %v190_v31 = vunpack.c.l.bf16 %v1107_v24  ;;  %v191_v32 = vunpack.c.h.bf16 %v1107_v24  ;;  %v908_v12 = vld [vmem:[%s1265_s2 + $0x60] ss:$12 sps:$4 sm:$0xff]   ;;  %v911_v13 = vld [vmem:[%s1265_s2 + $0x68] ss:$12 sps:$4 sm:$0xff]   ;;  %s1223_s4 = scalar_lea.sflag [#allocation3], %s162_s24 }
  0x1d   : > { %355 = vmatpush1.bf16.msra.mxu0 %v891_v11  ;;  %v203_v33 = vunpack.c.l.bf16 %v202_v26  ;;  %v204_v34 = vunpack.c.h.bf16 %v202_v26  ;;  %v568_v6 = vand.u32 %v903_v0, %v1074_v3  ;;  %v907_v3 = vld [vmem:[%s1265_s2 + $0x80] ss:$12 sps:$4 sm:$0xff]   ;;  %v910_v11 = vld [vmem:[%s1265_s2 + $0x64] ss:$12 sps:$4 sm:$0xff]   ;;  %v922_v22 = vld [vmem:[%s1265_s2 + $0x1c] ss:$12 sps:$4 sm:$0xff]  }
  0x1e   : > { %356 = vmatprep.subr.bf16.mxu0 %v893_v15  ;;  %v181_v38 = vpack.c.bf16 %v180_v30, %v179_v29  ;;  %v192_v39 = vsub.f32 %v187_v17, %v190_v31  ;;  %v193_v40 = vsub.f32 %v188_v18, %v191_v32  ;;  %v912_v15 = vld [vmem:[%s1265_s2 + $0x48] ss:$12 sps:$4 sm:$0xff]   ;;  %vm251_vm6 = vcmask 523264   ;;  %v924_v32 = vld [vmem:[%s1265_s2] ss:$12 sps:$4 sm:$0xff]   ;;  %s164_s27 = scalar_lea.vmem [#allocation2], %s835_s25 }
  0x1f   : > { %810 = vmatpush3.bf16.msra.mxu1 %v896_v25  ;;  %v205_v42 = vsub.f32 %v200_v19, %v203_v33  ;;  %v206_v43 = vsub.f32 %v201_v20, %v204_v34  ;;  %v918_v17 = vld [vmem:[%s1265_s2 + $0x34] ss:$12 sps:$4 sm:$0xff]   ;;  %v916_v20 = vld [vmem:[%s1265_s2 + $0x30] ss:$12 sps:$4 sm:$0xff]   ;;  %v920_v25 = vld [vmem:[%s1265_s2 + $0x18] ss:$12 sps:$4 sm:$0xff]  }
  0x20   : > { %811 = vmatprep.subr.bf16.mxu1 %v991_v5  ;;  %214 = vrot.lane.b32.xlu0 %v181_v38, %s993_s8  ;;  %v182_v45 = vunpack.c.l.bf16 %v181_v38  ;;  %v183_v46 = vunpack.c.h.bf16 %v181_v38  ;;  %v194_v47 = vpack.c.bf16 %v193_v40, %v192_v39  ;;  %vm254_vm7 = vcmask 654336   ;;  %v927_v33 = vld [vmem:[%s1265_s2 + $0x8] ss:$12 sps:$4 sm:$0xff]   ;;  %s682_s28 = sshll.u32 %s164_s27, 4  ;;  %s1213_s28 = int_to_ptr.vmem [resolvable:$true] %s682_s28 }
  0x21   : > { %357 = vmatpush1.bf16.msra.mxu0 %v895_v21  ;;  %v207_v49 = vpack.c.bf16 %v206_v43, %v205_v42  ;;  %v919_v21 = vld [vmem:[%s1265_s2 + $0x38] ss:$12 sps:$4 sm:$0xff]   ;;  %vm257_vm8 = vcmask 785408   ;;  %vm558_vm9 = vcmask 793600   ;;  %vm662_vm10 = vcmask 138240   ;;  %s928_s5 = scalar_lea.vmem %s1213_s28, 768  ;;  %p935_p0 = scmp.lt.s32.totalorder %s1213_s28, %s933_s7 }
  0x22   : > { %358 = vmatprep.subr.bf16.mxu0 %v897_v27  ;;  %v184_v50 = vsub.f32 %v179_v29, %v182_v45  ;;  %v185_v51 = vsub.f32 %v180_v30, %v183_v46  ;;  %230 = vrot.lane.b32.xlu1 %v194_v47, %s993_s8  ;;  %v195_v52 = vunpack.c.l.bf16 %v194_v47  ;;  %v196_v53 = vunpack.c.h.bf16 %v194_v47  ;;  %v926_v29 = vld [vmem:[%s1265_s2 + $0x4] ss:$12 sps:$4 sm:$0xff]   ;;  %p929_p11 = scmp.ne.s32.totalorder %s1213_s28, %s928_s5  ;;  %s934_s8 = scalar_lea.vmem %s933_s7, 1536 }
  0x23   : > { %v208_v54 = vunpack.c.l.bf16 %v207_v49  ;;  %v209_v55 = vunpack.c.h.bf16 %v207_v49  ;;  %812 = vmatpush3.bf16.msra.mxu1 %v900_v41  ;;  %p936_p1 = scmp.lt.s32.totalorder %s934_s8, %s928_s5 }
  0x24   : > { %v186_v56 = vpack.c.bf16 %v185_v51, %v184_v50  ;;  %v197_v57 = vsub.f32 %v192_v39, %v195_v52  ;;  %v198_v58 = vsub.f32 %v193_v40, %v196_v53  ;;  %817 = vmatprep.subr.bf16.mxu1 %v991_v5  ;;  %p930_p12 = pnand %p929_p11, %p1059_p5 }
  0x25   : > { %359 = vmatpush1.bf16.msra.mxu0 %v899_v35  ;;  %v210_v60 = vsub.f32 %v205_v42, %v208_v54  ;;  %v211_v61 = vsub.f32 %v206_v43, %v209_v55  ;;  %p937_p2 = por %p936_p1, %p935_p0 }
  0x26   : > { %572 = vmatprep.subr.bf16.mxu0 %v565_v44  ;;  %217 = vrot.lane.b32.xlu0 %v186_v56, %s994_s9  ;;  %v199_v59 = vpack.c.bf16 %v198_v58, %v197_v57  ;;  %p931_p13 = pneg %p930_p12 }
  0x27   : > { %v212_v62 = vpack.c.bf16 %v211_v61, %v210_v60 }
  0x28   : > { %233 = vrot.lane.b32.xlu1 %v199_v59, %s994_s9  ;;  %p938_p3 = pnand %p937_p2, %p931_p13 }
  0x2a   : > { %236 = vrot.lane.b32.xlu0 %v202_v26, %s995_s10  ;;  %v923_v26 = vld [vmem:[%s1265_s2 + $0x20] ss:$12 sps:$4 sm:$0xff]  }
  0x2c   : > { %239 = vrot.lane.b32.xlu1 %v207_v49, %s996_s11 }
  0x2e   : > { %242 = vrot.lane.b32.xlu0 %v212_v62, %s997_s17 }
  0x92   : > { %v215_v63 = vpop.permute.xlu0 %214 }
  0x93   : > { %v222_v1 = vsel %vm219_vm2, %v1100_v16, %v215_v63  ;;  %v915_v16 = vld [vmem:[%s1265_s2 + $0x50] ss:$12 sps:$4 sm:$0xff]  }
  0x94   : > { %v231_v14 = vpop.permute.xlu1 %230 }
  0x95   : > { %v246_v18 = vsel %vm219_vm2, %v1107_v24, %v231_v14 }
  0x98   : > { %v218_v4 = vpop.permute.xlu0 %217 }
  0x99   : > { %v225_v7 = vsel %vm223_vm3, %v222_v1, %v218_v4 }
  0x9a   : > { %v228_v9 = vsel %vm226_vm4, %v225_v7, 1065369472  ;;  %v234_v19 = vpop.permute.xlu1 %233 }
  0x9b   : > { %762 = vmatmul.mubr.msk.bf16.vlgmr.msra.gmra.mxu0 %vm329_vm5, %v228_v9  ;;  %814 = vmatmul.mubr.msk.bf16.vlgmr.msra.gmra.mxu1 %vm329_vm5, %v228_v9  ;;  %v248_v23 = vsel %vm223_vm3, %v246_v18, %v234_v19 }
  0x9c   : > { %573 = vmatpush1.bf16.msra.mxu0 %v562_v48  ;;  %818 = vmatpush3.bf16.msra.mxu1 %v568_v6  ;;  %v237_v24 = vpop.permute.xlu0 %236 }
  0x9d   : > { %574 = vmatprep.subr.bf16.mxu0 %v906_v8  ;;  %819 = vmatprep.subr.bf16.mxu1 %v991_v5  ;;  %v250_v27 = vsel %vm226_vm4, %v248_v23, %v237_v24 }
  0x9e   : > { %602 = vmatprep.mubr.bf16.mxu0 %v990_v2  ;;  %831 = vmatprep.mubr.msk.bf16.mxu1 %vm992_vm1, %v991_v5  ;;  %v914_v2 = vld [vmem:[%s1265_s2 + $0x4c] ss:$12 sps:$4 sm:$0xff]   ;;  %v240_v28 = vpop.permute.xlu1 %239 }
  0x9f   : > { %v253_v30 = vsel %vm251_vm6, %v250_v27, %v240_v28 }
  0xa0   : > { %575 = vmatpush1.bf16.msra.mxu0 %v904_v10  ;;  %820 = vmatpush3.bf16.msra.mxu1 %v907_v3  ;;  %v243_v31 = vpop.permute.xlu0 %242 }
  0xa1   : > { %576 = vmatprep.subr.bf16.mxu0 %v910_v11  ;;  %821 = vmatprep.subr.bf16.mxu1 %v991_v5  ;;  %v256_v34 = vsel %vm254_vm7, %v253_v30, %v243_v31 }
  0xa2   : > { %v258_v35 = vsel %vm257_vm8, %v256_v34, 1065369472 }
  0xa4   : > { %577 = vmatpush1.bf16.msra.mxu0 %v908_v12  ;;  %822 = vmatpush3.bf16.msra.mxu1 %v911_v13 }
  0xa5   : > { %578 = vmatprep.subr.bf16.mxu0 %v914_v2  ;;  %823 = vmatprep.subr.bf16.mxu1 %v991_v5 }
  0xa8   : > { %579 = vmatpush1.bf16.msra.mxu0 %v912_v15  ;;  %824 = vmatpush3.bf16.msra.mxu1 %v915_v16 }
  0xa9   : > { %580 = vmatprep.subr.bf16.mxu0 %v918_v17  ;;  %825 = vmatprep.subr.bf16.mxu1 %v991_v5 }
  0xac   : > { %581 = vmatpush1.bf16.msra.mxu0 %v916_v20  ;;  %826 = vmatpush3.bf16.msra.mxu1 %v919_v21 }
  0xad   : > { %582 = vmatprep.subr.bf16.mxu0 %v922_v22  ;;  %827 = vmatprep.subr.bf16.mxu1 %v991_v5 }
  0xb0   : > { %583 = vmatpush1.bf16.msra.mxu0 %v920_v25  ;;  %828 = vmatpush3.bf16.msra.mxu1 %v923_v26 }
  0xb1   : > { %584 = vmatprep.subr.bf16.mxu0 %v926_v29  ;;  %829 = vmatprep.subr.bf16.mxu1 %v991_v5 }
  0xb4   : > { %585 = vmatpush1.bf16.msra.mxu0 %v924_v32  ;;  %830 = vmatpush3.bf16.msra.mxu1 %v927_v33 }
  0xb7   : > { %785 = vmatmul.mubr.msk.bf16.vlgmr.msra.gmra.mxu0 %vm558_vm9, %v258_v35  ;;  %832 = vmatmul.mubr.msk.bf16.vlgmr.msra.gmra.mxu1 %vm558_vm9, %v258_v35 }
 0x15b   : > { %v421_v36 = vpop.f32.mrf.mxu1  ;;  %v378_v40 = vpop.f32.mrf.mxu0 }
 0x15d   : > { %v815_v37 = vpop.f32.mrf.mxu1  ;;  %v380_v41 = vpop.f32.mrf.mxu0 }
 0x15f   : > { %v424_v38 = vpop.f32.mrf.mxu1  ;;  %v382_v42 = vpop.f32.mrf.mxu0 }
 0x161   : > { %v816_v39 = vpop.f32.mrf.mxu1  ;;  %v384_v5 = vpop.f32.mrf.mxu0 }
 0x177   : > { %v604_v43 = vpop.f32.mrf.mxu0  ;;  %v647_v44 = vpop.f32.mrf.mxu1 }
 0x178   : > { %v654_v45 = vmul.f32 %v604_v43, %v378_v40  ;;  %v656_v46 = vmul.f32 %v647_v44, %v421_v36 }
 0x179   : > { %v606_v47 = vpop.f32.mrf.mxu0  ;;  %v833_v48 = vpop.f32.mrf.mxu1 }
 0x17a   : > { %660 = vst [vmem:[%s164_s27] sm:$0xff] %v654_v45  ;;  %663 = vst.msk [vmem:[%s164_s27 + $0x10] sm:$0xff] %vm662_vm10, %v656_v46  ;;  %v655_v49 = vmul.f32 %v606_v47, %v380_v41 }
 0x17b   : > { %v608_v50 = vpop.f32.mrf.mxu0  ;;  %v650_v51 = vpop.f32.mrf.mxu1 }
 0x17c   : > { %661 = vst [vmem:[%s164_s27 + $0x8] sm:$0xff] %v655_v49  ;;  %v657_v52 = vmul.f32 %v608_v50, %v382_v42  ;;  %v659_v53 = vmul.f32 %v650_v51, %v424_v38 }
 0x17d   : > { %v610_v54 = vpop.f32.mrf.mxu0  ;;  %v834_v55 = vpop.f32.mrf.mxu1 }
 0x17e   : > { %664 = vst [vmem:[%s164_s27 + $0x18] sm:$0xff] %v657_v52  ;;  %666 = vst.msk [vmem:[%s164_s27 + $0x28] sm:$0xff] %vm662_vm10, %v659_v53  ;;  %v658_v56 = vmul.f32 %v610_v54, %v384_v5 }
 0x180   : > { %665 = vst [vmem:[%s164_s27 + $0x20] sm:$0xff] %v658_v56 }
 0x181   : > { %941 = shalt.err (!%p938_p3)
}
 0x182   : > { %s942_s9 = scalar_lea.hbm %s1218_s30, 768  ;;  %s946_s17 = scalar_lea.hbm %s1266_s3, 1536 }
 0x183   : > { %p943_p4 = scmp.ne.s32.totalorder %s1218_s30, %s942_s9  ;;  %p947_p9 = scmp.lt.s32.totalorder %s1218_s30, %s1266_s3 }
 0x184   : > { %p948_p10 = scmp.lt.s32.totalorder %s946_s17, %s942_s9 }
 0x185   : > { %p944_p7 = pnand %p943_p4, %p1059_p5 }
 0x186   : > { %p949_p11 = por %p948_p10, %p947_p9 }
 0x187   : > { %p945_p8 = pneg %p944_p7 }
 0x189   : > { %p950_p12 = pnand %p949_p11, %p945_p8 }
 0x18b   : > { %953 = shalt.err (!%p950_p12)
}
 0x18c   : > { %s999_s24 = smov 384   ;;  %s1000_s25 = smov 24  }
 0x18d   : > { %837 = dma.vmem_to_hbm [thread:$0]  (%p1059_p5), %s1213_s28, 768, %s1218_s30, %s1223_s4, %s999_s24, %s999_s24, %s1000_s25  }
 0x18e PF: > { %p843_p13 = scmp.ge.s32.totalorder %s988_s15, 2  ;;  %s697_s26 = sand.u32 1, %s976_s12  }
 0x18f   : > { %s698_s27 = scalar_lea.sflag [#allocation3], %s697_s26 }
 0x190   : > { %p840_p0 = pnand %p843_p13, %p1063_p6 }
 0x192   : > { %p841_p1 = pneg %p840_p0 }
 0x194   : > { %971 = dma.done.wait (%p841_p1), %s698_s27, 768  }
 0x195   : > { %973 = vsyncadd (%p841_p1), %s698_s27, 4294966528  ;;  %p13_p2 = scmp.ge.s32.totalorder %s1046_s18, 4   ;;  %s1269_s12 = smov %s980_s13 }
 0x196   : > { %s1270_s13 = smov %s984_s14  ;;  %s1271_s14 = smov %s1057_s21 }
 0x197   : > { %s1272_s15 = smov %s1046_s18  ;;  %15 = sbr.rel (!%p13_p2) target bundleno = 3 (0x3), region = 67 }
 0x19c   :  { %703 = vsyncpa [#allocation3], 1 }
 0x19d   :  { %705 = vsyncpa [#allocation3 + $0x1], 1 }

</bundles_post_ra>
